<compile_context>
chip_gen: v7x
topology: tpu7x:2x2x1
jax: 0.10.0
libtpu: 0.0.40
codegen_flags: <defaults>
</compile_context>

<pallas_src>
import jax
import jax.numpy as jnp
from jax import lax
from jax.experimental import pallas as pl
from jax.experimental.pallas import tpu as pltpu


_CHUNK = 128                          # lane width; accumulator width
_PAYLOAD_TARGET = 4 * 1024 * 1024     # per-grid-step input bytes (both operands)


def _round_up(x, m):
    return (x + m - 1) // m * m


def _vmem_capacity_bytes():
    try:
        return int(pltpu.get_tpu_info().vmem_capacity_bytes)
    except Exception:
        return 64 * 1024 * 1024       # conservative: v7x per-TensorCore VMEM


def _choose_batch_tile(n):
    """Batch tile: <=64 rows, multiple of 8 (or == n). Prefer exact divisors;
    otherwise 64 with a trailing partial block (handled by the cdiv grid)."""
    if n <= 64:
        return n                       # block dim == full array dim: always legal
    for tn in (64, 56, 48, 40, 32, 24, 16, 8):
        if n % tn == 0:
            return tn
    return 64


def _make_soft_iou_kernel(tn, tl, fps, L, unroll):
    n_chunks = tl // _CHUNK

    def kernel(pred_ref, targ_ref, num_ref, sum_ref):
        s = pl.program_id(0)           # feature-split axis (v7x dual-TC path)
        j = pl.program_id(2)           # feature-tile index within the split

        @pl.when(j == 0)
        def _():
            num_ref[...] = jnp.zeros_like(num_ref)
            sum_ref[...] = jnp.zeros_like(sum_ref)

        # Unclamped global column offset of this tile. The DMA index_map clamps
        # to the last valid tile; a fully out-of-range tile is masked to zero.
        tile_off = (s * fps + j) * tl
        base_valid = L - tile_off
        col_ids = lax.broadcasted_iota(jnp.int32, (1, _CHUNK), 1)   # hoisted

        def body(c, carry):
            num_acc, sum_acc = carry
            off = pl.multiple_of(c * _CHUNK, _CHUNK)
            p = jax.nn.sigmoid(pred_ref[:, pl.ds(off, _CHUNK)].astype(jnp.float32))
            t = targ_ref[:, pl.ds(off, _CHUNK)].astype(jnp.float32)
            # Tail masking via select (never multiply: OOB contents are
            # undefined and may be NaN/Inf).
            mask = col_ids < (base_valid - c * _CHUNK)
            p = jnp.where(mask, p, 0.0)
            t = jnp.where(mask, t, 0.0)
            return num_acc + p * t, sum_acc + (p + t)

        zeros = jnp.zeros((tn, _CHUNK), jnp.float32)
        num_acc, sum_acc = lax.fori_loop(0, n_chunks, body, (zeros, zeros),
                                         unroll=unroll)
        num_ref[...] += num_acc
        sum_ref[...] += sum_acc

    return kernel


def soft_iou_loss(y_pred, y_true, e=1e-6, payload_bytes=_PAYLOAD_TARGET):
    """Equivalent of SoftIoULoss().forward(y_pred, y_true). Inputs NCHW (any
    float/bool dtype; read natively, accumulated in f32)."""
    n = y_pred.shape[0]
    # torch: squeeze(dim=1) then reshape(n, -1)  ==  reshape(n, -1)
    pred = y_pred.reshape(n, -1)
    targ = y_true.reshape(n, -1)
    L = pred.shape[1]
    assert targ.shape == (n, L)

    bpc = jnp.dtype(pred.dtype).itemsize + jnp.dtype(targ.dtype).itemsize

    tn = _choose_batch_tile(n)
    batch_tiles = pl.cdiv(n, tn)

    # Feature tile: each grid step moves ~payload_bytes of input (>=2-4 MiB
    # amortizes per-step overhead; <=~4-6 MiB keeps double-buffering well
    # inside v7x's 64 MiB/TC VMEM).
    tl = max(_CHUNK, (payload_bytes // (tn * bpc)) // _CHUNK * _CHUNK)
    tl = min(tl, _round_up(L, _CHUNK))
    nt = pl.cdiv(L, tl)                # global feature tiles

    # v7x: if the batch axis has a single tile, split the feature range into
    # two "parallel" halves so both TensorCores get work (combined in wrapper).
    splits = 2 if (batch_tiles < 2 and nt >= 2) else 1
    fps = pl.cdiv(nt, splits)          # feature tiles per split

    # Keep vreg pressure bounded: small batch tiles unroll more.
    unroll = max(1, min(8, 64 // max(tn, 8)))

    # Resident VMEM use is ~2x payload (double-buffered inputs) + tiny
    # accumulators; 48 MiB is ample on every generation and fits v7x.
    vmem_limit = min(_vmem_capacity_bytes() * 3 // 4, 48 * 1024 * 1024)

    def in_map(s, i, j):
        return (i, jnp.minimum(s * fps + j, nt - 1))

    kernel = _make_soft_iou_kernel(tn, tl, fps, L, unroll)

    num128, sum128 = pl.pallas_call(
        kernel,
        out_shape=(
            jax.ShapeDtypeStruct((splits, n, _CHUNK), jnp.float32),
            jax.ShapeDtypeStruct((splits, n, _CHUNK), jnp.float32),
        ),
        grid_spec=pltpu.PrefetchScalarGridSpec(
            num_scalar_prefetch=0,
            grid=(splits, batch_tiles, fps),
            in_specs=[
                pl.BlockSpec((tn, tl), in_map),
                pl.BlockSpec((tn, tl), in_map),
            ],
            out_specs=[
                pl.BlockSpec((None, tn, _CHUNK), lambda s, i, j: (s, i, 0)),
                pl.BlockSpec((None, tn, _CHUNK), lambda s, i, j: (s, i, 0)),
            ],
        ),
        compiler_params=pltpu.CompilerParams(
            dimension_semantics=("parallel", "parallel", "arbitrary"),
            vmem_limit_bytes=int(vmem_limit),
        ),
    )(pred, targ)

    # Tiny finalization in plain JAX: combine splits, cross-lane reduce,
    # den = sum(p + t) - sum(p*t) + e, mean over the batch.
    num = jnp.sum(num128, axis=(0, 2))          # (n,)
    tot = jnp.sum(sum128, axis=(0, 2))          # (n,)
    den = tot - num + e
    iou = num / den
    return jnp.mean(1.0 - iou)


if __name__ == "__main__":
    def ref_loss(y_pred, y_true, e=1e-6):
        n = y_pred.shape[0]
        p = jax.nn.sigmoid(y_pred.reshape(n, -1).astype(jnp.float32))
        t = y_true.reshape(n, -1).astype(jnp.float32)
        num = (p * t).sum(1)
        den = (p + t - p * t).sum(1) + e
        return jnp.mean(1.0 - num / den)

    key = jax.random.PRNGKey(0)
    k1, k2, k3, k4, k5, k6 = jax.random.split(key, 6)

    # 1) NCHW logits / {0,1} masks; feature length 1024 (128-aligned).
    y_pred = jax.random.normal(k1, (2, 4, 16, 16), dtype=jnp.float32)
    y_true = (jax.random.uniform(k2, (2, 4, 16, 16)) > 0.5).astype(jnp.float32)
    loss = soft_iou_loss(y_pred, y_true)
    jax.block_until_ready(loss)
    ref = ref_loss(y_pred, y_true)
    assert jnp.allclose(loss, ref, atol=1e-5, rtol=1e-5), (loss, ref)

    # 2) feature length 100 (< 128, unaligned) -> in-kernel tail masking.
    y_pred2 = jax.random.normal(k3, (2, 1, 10, 10), dtype=jnp.float32)
    y_true2 = (jax.random.uniform(k4, (2, 1, 10, 10)) > 0.5).astype(jnp.float32)
    loss2 = soft_iou_loss(y_pred2, y_true2)
    jax.block_until_ready(loss2)
    ref2 = ref_loss(y_pred2, y_true2)
    assert jnp.allclose(loss2, ref2, atol=1e-5, rtol=1e-5), (loss2, ref2)

    # 3) Small payload target forces multiple feature tiles, the size-2
    #    "parallel" split axis (v7x dual-TC path) and an unaligned tail tile.
    y_pred3 = jax.random.normal(k5, (2, 3, 36, 40), dtype=jnp.float32)   # L = 4320
    y_true3 = (jax.random.uniform(k6, (2, 3, 36, 40)) > 0.5).astype(jnp.float32)
    loss3 = soft_iou_loss(y_pred3, y_true3, payload_bytes=64 * 1024)
    jax.block_until_ready(loss3)
    ref3 = ref_loss(y_pred3, y_true3)
    assert jnp.allclose(loss3, ref3, atol=1e-5, rtol=1e-5), (loss3, ref3)

    # 4) Batch > 64 with a trailing partial batch tile (cdiv batch grid).
    y_pred4 = jax.random.normal(k1, (70, 1, 8, 8), dtype=jnp.float32)
    y_true4 = (jax.random.uniform(k2, (70, 1, 8, 8)) > 0.5).astype(jnp.float32)
    loss4 = soft_iou_loss(y_pred4, y_true4)
    jax.block_until_ready(loss4)
    ref4 = ref_loss(y_pred4, y_true4)
    assert jnp.allclose(loss4, ref4, atol=1e-5, rtol=1e-5), (loss4, ref4)

    print("KERNEL_OK")
</pallas_src>

<mosaic_0001>
module attributes {stable_mosaic.version = 11 : i64} {
  func.func @kernel(%arg0: i32, %arg1: i32, %arg2: i32, %arg3: memref<2x1024xf32, #tpu.memory_space<vmem>>, %arg4: memref<2x1024xf32, #tpu.memory_space<vmem>>, %arg5: memref<1x2x128xf32, #tpu.memory_space<vmem>>, %arg6: memref<1x2x128xf32, #tpu.memory_space<vmem>>) attributes {dimension_semantics = [#tpu.dimension_semantics<parallel>, #tpu.dimension_semantics<parallel>, #tpu.dimension_semantics<arbitrary>], iteration_bounds = array<i64: 1, 1, 1>, scalar_prefetch = 0 : i64, scratch_operands = 0 : i64, tpu.core_type = #tpu.core_type<tc>, window_params = [{transform_indices = @transform_0, window_bounds = array<i64: 2, 1024>}, {transform_indices = @transform_1, window_bounds = array<i64: 2, 1024>}, {transform_indices = @transform_2, window_bounds = array<i64: 1, 2, 128>}, {transform_indices = @transform_3, window_bounds = array<i64: 1, 2, 128>}]} {
    %c0_i32 = arith.constant 0 : i32
    %0 = arith.cmpi eq, %arg2, %c0_i32 : i32
    %1 = arith.extui %0 : i1 to i32
    %c0_i32_0 = arith.constant 0 : i32
    %2 = arith.cmpi ne, %1, %c0_i32_0 : i32
    scf.if %2 {
      %cst_70 = arith.constant 0.000000e+00 : f32
      %237 = vector.broadcast %cst_70 : f32 to vector<2x128xf32>
      %c0_71 = arith.constant 0 : index
      %c0_72 = arith.constant 0 : index
      %c0_73 = arith.constant 0 : index
      %238 = vector.load %arg5[%c0_71, %c0_72, %c0_73] : memref<1x2x128xf32, #tpu.memory_space<vmem>>, vector<1x2x128xf32>
      %239 = vector.shape_cast %238 : vector<1x2x128xf32> to vector<2x128xf32>
      %240 = vector.shape_cast %237 : vector<2x128xf32> to vector<1x2x128xf32>
      tpu.vector_store %arg5[%c0_71, %c0_72, %c0_73], %240 {strides = array<i32>} : memref<1x2x128xf32, #tpu.memory_space<vmem>>, vector<1x2x128xf32>,
      %cst_74 = arith.constant 0.000000e+00 : f32
      %241 = vector.broadcast %cst_74 : f32 to vector<2x128xf32>
      %c0_75 = arith.constant 0 : index
      %c0_76 = arith.constant 0 : index
      %c0_77 = arith.constant 0 : index
      %242 = vector.load %arg6[%c0_75, %c0_76, %c0_77] : memref<1x2x128xf32, #tpu.memory_space<vmem>>, vector<1x2x128xf32>
      %243 = vector.shape_cast %242 : vector<1x2x128xf32> to vector<2x128xf32>
      %244 = vector.shape_cast %241 : vector<2x128xf32> to vector<1x2x128xf32>
      tpu.vector_store %arg6[%c0_75, %c0_76, %c0_77], %244 {strides = array<i32>} : memref<1x2x128xf32, #tpu.memory_space<vmem>>, vector<1x2x128xf32>,
    } else {
    }
    %c1_i32 = arith.constant 1 : i32
    %3 = arith.muli %arg0, %c1_i32 : i32
    %4 = arith.addi %3, %arg2 : i32
    %c1024_i32 = arith.constant 1024 : i32
    %5 = arith.muli %4, %c1024_i32 : i32
    %c1024_i32_1 = arith.constant 1024 : i32
    %6 = arith.subi %c1024_i32_1, %5 : i32
    %7 = tpu.iota {dimensions = array<i32: 1>} : vector<1x128xi32>
    %cst = arith.constant 0.000000e+00 : f32
    %8 = vector.broadcast %cst : f32 to vector<2x128xf32>
    %c0_i32_2 = arith.constant 0 : i32
    %c128_i32 = arith.constant 128 : i32
    %9 = arith.muli %c0_i32_2, %c128_i32 : i32
    %10 = tpu.assume_multiple %9, 128 : i32
    %c0 = arith.constant 0 : index
    %11 = arith.index_cast %10 : i32 to index
    %12 = vector.load %arg3[%c0, %11] : memref<2x1024xf32, #tpu.memory_space<vmem>>, vector<2x128xf32>
    %13 = arith.negf %12 : vector<2x128xf32>
    %14 = math.exp %13 : vector<2x128xf32>
    %cst_3 = arith.constant 1.000000e+00 : f32
    %15 = vector.broadcast %cst_3 : f32 to vector<2x128xf32>
    %16 = arith.addf %15, %14 : vector<2x128xf32>
    %17 = arith.divf %15, %16 : vector<2x128xf32>
    %c0_4 = arith.constant 0 : index
    %18 = arith.index_cast %10 : i32 to index
    %19 = vector.load %arg4[%c0_4, %18] : memref<2x1024xf32, #tpu.memory_space<vmem>>, vector<2x128xf32>
    %c128_i32_5 = arith.constant 128 : i32
    %20 = arith.muli %c0_i32_2, %c128_i32_5 : i32
    %21 = arith.subi %6, %20 : i32
    %22 = vector.broadcast %21 : i32 to vector<1x128xi32>
    %23 = arith.cmpi slt, %7, %22 : vector<1x128xi32>
    %cst_6 = arith.constant 0.000000e+00 : f32
    %24 = vector.shape_cast %23 : vector<1x128xi1> to vector<1x128xi1>
    %25 = vector.broadcast %24 : vector<1x128xi1> to vector<2x128xi1>
    %26 = vector.broadcast %cst_6 : f32 to vector<2x128xf32>
    %27 = arith.select %25, %17, %26 : vector<2x128xi1>, vector<2x128xf32>
    %cst_7 = arith.constant 0.000000e+00 : f32
    %28 = vector.shape_cast %23 : vector<1x128xi1> to vector<1x128xi1>
    %29 = vector.broadcast %28 : vector<1x128xi1> to vector<2x128xi1>
    %30 = vector.broadcast %cst_7 : f32 to vector<2x128xf32>
    %31 = arith.select %29, %19, %30 : vector<2x128xi1>, vector<2x128xf32>
    %32 = arith.mulf %27, %31 : vector<2x128xf32>
    %33 = arith.addf %8, %32 : vector<2x128xf32>
    %34 = arith.addf %27, %31 : vector<2x128xf32>
    %35 = arith.addf %8, %34 : vector<2x128xf32>
    %c1_i32_8 = arith.constant 1 : i32
    %c128_i32_9 = arith.constant 128 : i32
    %36 = arith.muli %c1_i32_8, %c128_i32_9 : i32
    %37 = tpu.assume_multiple %36, 128 : i32
    %c0_10 = arith.constant 0 : index
    %38 = arith.index_cast %37 : i32 to index
    %39 = vector.load %arg3[%c0_10, %38] : memref<2x1024xf32, #tpu.memory_space<vmem>>, vector<2x128xf32>
    %40 = arith.negf %39 : vector<2x128xf32>
    %41 = math.exp %40 : vector<2x128xf32>
    %cst_11 = arith.constant 1.000000e+00 : f32
    %42 = vector.broadcast %cst_11 : f32 to vector<2x128xf32>
    %43 = arith.addf %42, %41 : vector<2x128xf32>
    %44 = arith.divf %42, %43 : vector<2x128xf32>
    %c0_12 = arith.constant 0 : index
    %45 = arith.index_cast %37 : i32 to index
    %46 = vector.load %arg4[%c0_12, %45] : memref<2x1024xf32, #tpu.memory_space<vmem>>, vector<2x128xf32>
    %c128_i32_13 = arith.constant 128 : i32
    %47 = arith.muli %c1_i32_8, %c128_i32_13 : i32
    %48 = arith.subi %6, %47 : i32
    %49 = vector.broadcast %48 : i32 to vector<1x128xi32>
    %50 = arith.cmpi slt, %7, %49 : vector<1x128xi32>
    %cst_14 = arith.constant 0.000000e+00 : f32
    %51 = vector.shape_cast %50 : vector<1x128xi1> to vector<1x128xi1>
    %52 = vector.broadcast %51 : vector<1x128xi1> to vector<2x128xi1>
    %53 = vector.broadcast %cst_14 : f32 to vector<2x128xf32>
    %54 = arith.select %52, %44, %53 : vector<2x128xi1>, vector<2x128xf32>
    %cst_15 = arith.constant 0.000000e+00 : f32
    %55 = vector.shape_cast %50 : vector<1x128xi1> to vector<1x128xi1>
    %56 = vector.broadcast %55 : vector<1x128xi1> to vector<2x128xi1>
    %57 = vector.broadcast %cst_15 : f32 to vector<2x128xf32>
    %58 = arith.select %56, %46, %57 : vector<2x128xi1>, vector<2x128xf32>
    %59 = arith.mulf %54, %58 : vector<2x128xf32>
    %60 = arith.addf %33, %59 : vector<2x128xf32>
    %61 = arith.addf %54, %58 : vector<2x128xf32>
    %62 = arith.addf %35, %61 : vector<2x128xf32>
    %c2_i32 = arith.constant 2 : i32
    %c128_i32_16 = arith.constant 128 : i32
    %63 = arith.muli %c2_i32, %c128_i32_16 : i32
    %64 = tpu.assume_multiple %63, 128 : i32
    %c0_17 = arith.constant 0 : index
    %65 = arith.index_cast %64 : i32 to index
    %66 = vector.load %arg3[%c0_17, %65] : memref<2x1024xf32, #tpu.memory_space<vmem>>, vector<2x128xf32>
    %67 = arith.negf %66 : vector<2x128xf32>
    %68 = math.exp %67 : vector<2x128xf32>
    %cst_18 = arith.constant 1.000000e+00 : f32
    %69 = vector.broadcast %cst_18 : f32 to vector<2x128xf32>
    %70 = arith.addf %69, %68 : vector<2x128xf32>
    %71 = arith.divf %69, %70 : vector<2x128xf32>
    %c0_19 = arith.constant 0 : index
    %72 = arith.index_cast %64 : i32 to index
    %73 = vector.load %arg4[%c0_19, %72] : memref<2x1024xf32, #tpu.memory_space<vmem>>, vector<2x128xf32>
    %c128_i32_20 = arith.constant 128 : i32
    %74 = arith.muli %c2_i32, %c128_i32_20 : i32
    %75 = arith.subi %6, %74 : i32
    %76 = vector.broadcast %75 : i32 to vector<1x128xi32>
    %77 = arith.cmpi slt, %7, %76 : vector<1x128xi32>
    %cst_21 = arith.constant 0.000000e+00 : f32
    %78 = vector.shape_cast %77 : vector<1x128xi1> to vector<1x128xi1>
    %79 = vector.broadcast %78 : vector<1x128xi1> to vector<2x128xi1>
    %80 = vector.broadcast %cst_21 : f32 to vector<2x128xf32>
    %81 = arith.select %79, %71, %80 : vector<2x128xi1>, vector<2x128xf32>
    %cst_22 = arith.constant 0.000000e+00 : f32
    %82 = vector.shape_cast %77 : vector<1x128xi1> to vector<1x128xi1>
    %83 = vector.broadcast %82 : vector<1x128xi1> to vector<2x128xi1>
    %84 = vector.broadcast %cst_22 : f32 to vector<2x128xf32>
    %85 = arith.select %83, %73, %84 : vector<2x128xi1>, vector<2x128xf32>
    %86 = arith.mulf %81, %85 : vector<2x128xf32>
    %87 = arith.addf %60, %86 : vector<2x128xf32>
    %88 = arith.addf %81, %85 : vector<2x128xf32>
    %89 = arith.addf %62, %88 : vector<2x128xf32>
    %c3_i32 = arith.constant 3 : i32
    %c128_i32_23 = arith.constant 128 : i32
    %90 = arith.muli %c3_i32, %c128_i32_23 : i32
    %91 = tpu.assume_multiple %90, 128 : i32
    %c0_24 = arith.constant 0 : index
    %92 = arith.index_cast %91 : i32 to index
    %93 = vector.load %arg3[%c0_24, %92] : memref<2x1024xf32, #tpu.memory_space<vmem>>, vector<2x128xf32>
    %94 = arith.negf %93 : vector<2x128xf32>
    %95 = math.exp %94 : vector<2x128xf32>
    %cst_25 = arith.constant 1.000000e+00 : f32
    %96 = vector.broadcast %cst_25 : f32 to vector<2x128xf32>
    %97 = arith.addf %96, %95 : vector<2x128xf32>
    %98 = arith.divf %96, %97 : vector<2x128xf32>
    %c0_26 = arith.constant 0 : index
    %99 = arith.index_cast %91 : i32 to index
    %100 = vector.load %arg4[%c0_26, %99] : memref<2x1024xf32, #tpu.memory_space<vmem>>, vector<2x128xf32>
    %c128_i32_27 = arith.constant 128 : i32
    %101 = arith.muli %c3_i32, %c128_i32_27 : i32
    %102 = arith.subi %6, %101 : i32
    %103 = vector.broadcast %102 : i32 to vector<1x128xi32>
    %104 = arith.cmpi slt, %7, %103 : vector<1x128xi32>
    %cst_28 = arith.constant 0.000000e+00 : f32
    %105 = vector.shape_cast %104 : vector<1x128xi1> to vector<1x128xi1>
    %106 = vector.broadcast %105 : vector<1x128xi1> to vector<2x128xi1>
    %107 = vector.broadcast %cst_28 : f32 to vector<2x128xf32>
    %108 = arith.select %106, %98, %107 : vector<2x128xi1>, vector<2x128xf32>
    %cst_29 = arith.constant 0.000000e+00 : f32
    %109 = vector.shape_cast %104 : vector<1x128xi1> to vector<1x128xi1>
    %110 = vector.broadcast %109 : vector<1x128xi1> to vector<2x128xi1>
    %111 = vector.broadcast %cst_29 : f32 to vector<2x128xf32>
    %112 = arith.select %110, %100, %111 : vector<2x128xi1>, vector<2x128xf32>
    %113 = arith.mulf %108, %112 : vector<2x128xf32>
    %114 = arith.addf %87, %113 : vector<2x128xf32>
    %115 = arith.addf %108, %112 : vector<2x128xf32>
    %116 = arith.addf %89, %115 : vector<2x128xf32>
    %c4_i32 = arith.constant 4 : i32
    %c128_i32_30 = arith.constant 128 : i32
    %117 = arith.muli %c4_i32, %c128_i32_30 : i32
    %118 = tpu.assume_multiple %117, 128 : i32
    %c0_31 = arith.constant 0 : index
    %119 = arith.index_cast %118 : i32 to index
    %120 = vector.load %arg3[%c0_31, %119] : memref<2x1024xf32, #tpu.memory_space<vmem>>, vector<2x128xf32>
    %121 = arith.negf %120 : vector<2x128xf32>
    %122 = math.exp %121 : vector<2x128xf32>
    %cst_32 = arith.constant 1.000000e+00 : f32
    %123 = vector.broadcast %cst_32 : f32 to vector<2x128xf32>
    %124 = arith.addf %123, %122 : vector<2x128xf32>
    %125 = arith.divf %123, %124 : vector<2x128xf32>
    %c0_33 = arith.constant 0 : index
    %126 = arith.index_cast %118 : i32 to index
    %127 = vector.load %arg4[%c0_33, %126] : memref<2x1024xf32, #tpu.memory_space<vmem>>, vector<2x128xf32>
    %c128_i32_34 = arith.constant 128 : i32
    %128 = arith.muli %c4_i32, %c128_i32_34 : i32
    %129 = arith.subi %6, %128 : i32
    %130 = vector.broadcast %129 : i32 to vector<1x128xi32>
    %131 = arith.cmpi slt, %7, %130 : vector<1x128xi32>
    %cst_35 = arith.constant 0.000000e+00 : f32
    %132 = vector.shape_cast %131 : vector<1x128xi1> to vector<1x128xi1>
    %133 = vector.broadcast %132 : vector<1x128xi1> to vector<2x128xi1>
    %134 = vector.broadcast %cst_35 : f32 to vector<2x128xf32>
    %135 = arith.select %133, %125, %134 : vector<2x128xi1>, vector<2x128xf32>
    %cst_36 = arith.constant 0.000000e+00 : f32
    %136 = vector.shape_cast %131 : vector<1x128xi1> to vector<1x128xi1>
    %137 = vector.broadcast %136 : vector<1x128xi1> to vector<2x128xi1>
    %138 = vector.broadcast %cst_36 : f32 to vector<2x128xf32>
    %139 = arith.select %137, %127, %138 : vector<2x128xi1>, vector<2x128xf32>
    %140 = arith.mulf %135, %139 : vector<2x128xf32>
    %141 = arith.addf %114, %140 : vector<2x128xf32>
    %142 = arith.addf %135, %139 : vector<2x128xf32>
    %143 = arith.addf %116, %142 : vector<2x128xf32>
    %c5_i32 = arith.constant 5 : i32
    %c128_i32_37 = arith.constant 128 : i32
    %144 = arith.muli %c5_i32, %c128_i32_37 : i32
    %145 = tpu.assume_multiple %144, 128 : i32
    %c0_38 = arith.constant 0 : index
    %146 = arith.index_cast %145 : i32 to index
    %147 = vector.load %arg3[%c0_38, %146] : memref<2x1024xf32, #tpu.memory_space<vmem>>, vector<2x128xf32>
    %148 = arith.negf %147 : vector<2x128xf32>
    %149 = math.exp %148 : vector<2x128xf32>
    %cst_39 = arith.constant 1.000000e+00 : f32
    %150 = vector.broadcast %cst_39 : f32 to vector<2x128xf32>
    %151 = arith.addf %150, %149 : vector<2x128xf32>
    %152 = arith.divf %150, %151 : vector<2x128xf32>
    %c0_40 = arith.constant 0 : index
    %153 = arith.index_cast %145 : i32 to index
    %154 = vector.load %arg4[%c0_40, %153] : memref<2x1024xf32, #tpu.memory_space<vmem>>, vector<2x128xf32>
    %c128_i32_41 = arith.constant 128 : i32
    %155 = arith.muli %c5_i32, %c128_i32_41 : i32
    %156 = arith.subi %6, %155 : i32
    %157 = vector.broadcast %156 : i32 to vector<1x128xi32>
    %158 = arith.cmpi slt, %7, %157 : vector<1x128xi32>
    %cst_42 = arith.constant 0.000000e+00 : f32
    %159 = vector.shape_cast %158 : vector<1x128xi1> to vector<1x128xi1>
    %160 = vector.broadcast %159 : vector<1x128xi1> to vector<2x128xi1>
    %161 = vector.broadcast %cst_42 : f32 to vector<2x128xf32>
    %162 = arith.select %160, %152, %161 : vector<2x128xi1>, vector<2x128xf32>
    %cst_43 = arith.constant 0.000000e+00 : f32
    %163 = vector.shape_cast %158 : vector<1x128xi1> to vector<1x128xi1>
    %164 = vector.broadcast %163 : vector<1x128xi1> to vector<2x128xi1>
    %165 = vector.broadcast %cst_43 : f32 to vector<2x128xf32>
    %166 = arith.select %164, %154, %165 : vector<2x128xi1>, vector<2x128xf32>
    %167 = arith.mulf %162, %166 : vector<2x128xf32>
    %168 = arith.addf %141, %167 : vector<2x128xf32>
    %169 = arith.addf %162, %166 : vector<2x128xf32>
    %170 = arith.addf %143, %169 : vector<2x128xf32>
    %c6_i32 = arith.constant 6 : i32
    %c128_i32_44 = arith.constant 128 : i32
    %171 = arith.muli %c6_i32, %c128_i32_44 : i32
    %172 = tpu.assume_multiple %171, 128 : i32
    %c0_45 = arith.constant 0 : index
    %173 = arith.index_cast %172 : i32 to index
    %174 = vector.load %arg3[%c0_45, %173] : memref<2x1024xf32, #tpu.memory_space<vmem>>, vector<2x128xf32>
    %175 = arith.negf %174 : vector<2x128xf32>
    %176 = math.exp %175 : vector<2x128xf32>
    %cst_46 = arith.constant 1.000000e+00 : f32
    %177 = vector.broadcast %cst_46 : f32 to vector<2x128xf32>
    %178 = arith.addf %177, %176 : vector<2x128xf32>
    %179 = arith.divf %177, %178 : vector<2x128xf32>
    %c0_47 = arith.constant 0 : index
    %180 = arith.index_cast %172 : i32 to index
    %181 = vector.load %arg4[%c0_47, %180] : memref<2x1024xf32, #tpu.memory_space<vmem>>, vector<2x128xf32>
    %c128_i32_48 = arith.constant 128 : i32
    %182 = arith.muli %c6_i32, %c128_i32_48 : i32
    %183 = arith.subi %6, %182 : i32
    %184 = vector.broadcast %183 : i32 to vector<1x128xi32>
    %185 = arith.cmpi slt, %7, %184 : vector<1x128xi32>
    %cst_49 = arith.constant 0.000000e+00 : f32
    %186 = vector.shape_cast %185 : vector<1x128xi1> to vector<1x128xi1>
    %187 = vector.broadcast %186 : vector<1x128xi1> to vector<2x128xi1>
    %188 = vector.broadcast %cst_49 : f32 to vector<2x128xf32>
    %189 = arith.select %187, %179, %188 : vector<2x128xi1>, vector<2x128xf32>
    %cst_50 = arith.constant 0.000000e+00 : f32
    %190 = vector.shape_cast %185 : vector<1x128xi1> to vector<1x128xi1>
    %191 = vector.broadcast %190 : vector<1x128xi1> to vector<2x128xi1>
    %192 = vector.broadcast %cst_50 : f32 to vector<2x128xf32>
    %193 = arith.select %191, %181, %192 : vector<2x128xi1>, vector<2x128xf32>
    %194 = arith.mulf %189, %193 : vector<2x128xf32>
    %195 = arith.addf %168, %194 : vector<2x128xf32>
    %196 = arith.addf %189, %193 : vector<2x128xf32>
    %197 = arith.addf %170, %196 : vector<2x128xf32>
    %c7_i32 = arith.constant 7 : i32
    %c128_i32_51 = arith.constant 128 : i32
    %198 = arith.muli %c7_i32, %c128_i32_51 : i32
    %199 = tpu.assume_multiple %198, 128 : i32
    %c0_52 = arith.constant 0 : index
    %200 = arith.index_cast %199 : i32 to index
    %201 = vector.load %arg3[%c0_52, %200] : memref<2x1024xf32, #tpu.memory_space<vmem>>, vector<2x128xf32>
    %202 = arith.negf %201 : vector<2x128xf32>
    %203 = math.exp %202 : vector<2x128xf32>
    %cst_53 = arith.constant 1.000000e+00 : f32
    %204 = vector.broadcast %cst_53 : f32 to vector<2x128xf32>
    %205 = arith.addf %204, %203 : vector<2x128xf32>
    %206 = arith.divf %204, %205 : vector<2x128xf32>
    %c0_54 = arith.constant 0 : index
    %207 = arith.index_cast %199 : i32 to index
    %208 = vector.load %arg4[%c0_54, %207] : memref<2x1024xf32, #tpu.memory_space<vmem>>, vector<2x128xf32>
    %c128_i32_55 = arith.constant 128 : i32
    %209 = arith.muli %c7_i32, %c128_i32_55 : i32
    %210 = arith.subi %6, %209 : i32
    %211 = vector.broadcast %210 : i32 to vector<1x128xi32>
    %212 = arith.cmpi slt, %7, %211 : vector<1x128xi32>
    %cst_56 = arith.constant 0.000000e+00 : f32
    %213 = vector.shape_cast %212 : vector<1x128xi1> to vector<1x128xi1>
    %214 = vector.broadcast %213 : vector<1x128xi1> to vector<2x128xi1>
    %215 = vector.broadcast %cst_56 : f32 to vector<2x128xf32>
    %216 = arith.select %214, %206, %215 : vector<2x128xi1>, vector<2x128xf32>
    %cst_57 = arith.constant 0.000000e+00 : f32
    %217 = vector.shape_cast %212 : vector<1x128xi1> to vector<1x128xi1>
    %218 = vector.broadcast %217 : vector<1x128xi1> to vector<2x128xi1>
    %219 = vector.broadcast %cst_57 : f32 to vector<2x128xf32>
    %220 = arith.select %218, %208, %219 : vector<2x128xi1>, vector<2x128xf32>
    %221 = arith.mulf %216, %220 : vector<2x128xf32>
    %222 = arith.addf %195, %221 : vector<2x128xf32>
    %223 = arith.addf %216, %220 : vector<2x128xf32>
    %224 = arith.addf %197, %223 : vector<2x128xf32>
    %c8_i32 = arith.constant 8 : i32
    %c0_58 = arith.constant 0 : index
    %c0_59 = arith.constant 0 : index
    %c0_60 = arith.constant 0 : index
    %225 = vector.load %arg5[%c0_58, %c0_59, %c0_60] : memref<1x2x128xf32, #tpu.memory_space<vmem>>, vector<1x2x128xf32>
    %226 = vector.shape_cast %225 : vector<1x2x128xf32> to vector<2x128xf32>
    %227 = arith.addf %226, %222 : vector<2x128xf32>
    %c0_61 = arith.constant 0 : index
    %c0_62 = arith.constant 0 : index
    %c0_63 = arith.constant 0 : index
    %228 = vector.load %arg5[%c0_61, %c0_62, %c0_63] : memref<1x2x128xf32, #tpu.memory_space<vmem>>, vector<1x2x128xf32>
    %229 = vector.shape_cast %228 : vector<1x2x128xf32> to vector<2x128xf32>
    %230 = vector.shape_cast %227 : vector<2x128xf32> to vector<1x2x128xf32>
    tpu.vector_store %arg5[%c0_61, %c0_62, %c0_63], %230 {strides = array<i32>} : memref<1x2x128xf32, #tpu.memory_space<vmem>>, vector<1x2x128xf32>,
    %c0_64 = arith.constant 0 : index
    %c0_65 = arith.constant 0 : index
    %c0_66 = arith.constant 0 : index
    %231 = vector.load %arg6[%c0_64, %c0_65, %c0_66] : memref<1x2x128xf32, #tpu.memory_space<vmem>>, vector<1x2x128xf32>
    %232 = vector.shape_cast %231 : vector<1x2x128xf32> to vector<2x128xf32>
    %233 = arith.addf %232, %224 : vector<2x128xf32>
    %c0_67 = arith.constant 0 : index
    %c0_68 = arith.constant 0 : index
    %c0_69 = arith.constant 0 : index
    %234 = vector.load %arg6[%c0_67, %c0_68, %c0_69] : memref<1x2x128xf32, #tpu.memory_space<vmem>>, vector<1x2x128xf32>
    %235 = vector.shape_cast %234 : vector<1x2x128xf32> to vector<2x128xf32>
    %236 = vector.shape_cast %233 : vector<2x128xf32> to vector<1x2x128xf32>
    tpu.vector_store %arg6[%c0_67, %c0_68, %c0_69], %236 {strides = array<i32>} : memref<1x2x128xf32, #tpu.memory_space<vmem>>, vector<1x2x128xf32>,
    return
  }
  func.func @transform_0(%arg0: i32, %arg1: i32, %arg2: i32) -> (i32, i32) {
    %c1_i32 = arith.constant 1 : i32
    %0 = arith.muli %arg0, %c1_i32 : i32
    %1 = arith.addi %0, %arg2 : i32
    %c0_i32 = arith.constant 0 : i32
    %2 = arith.minsi %1, %c0_i32 : i32
    %c0_i32_0 = arith.constant 0 : i32
    return %arg1, %2 : i32, i32
  }
  func.func @transform_1(%arg0: i32, %arg1: i32, %arg2: i32) -> (i32, i32) {
    %c1_i32 = arith.constant 1 : i32
    %0 = arith.muli %arg0, %c1_i32 : i32
    %1 = arith.addi %0, %arg2 : i32
    %c0_i32 = arith.constant 0 : i32
    %2 = arith.minsi %1, %c0_i32 : i32
    %c0_i32_0 = arith.constant 0 : i32
    return %arg1, %2 : i32, i32
  }
  func.func @transform_2(%arg0: i32, %arg1: i32, %arg2: i32) -> (i32, i32, i32) {
    %c0_i32 = arith.constant 0 : i32
    %c0_i32_0 = arith.constant 0 : i32
    return %arg0, %arg1, %c0_i32 : i32, i32, i32
  }
  func.func @transform_3(%arg0: i32, %arg1: i32, %arg2: i32) -> (i32, i32, i32) {
    %c0_i32 = arith.constant 0 : i32
    %c0_i32_0 = arith.constant 0 : i32
    return %arg0, %arg1, %c0_i32 : i32, i32, i32
  }
}

</mosaic_0001>

<bundles_post_ra>
// kernel: tpu_custom_call.1
= control target key start
LH: loop header
LB: loop body
LE: loop exit
PB: predicated region body
PF: predicated region fallthrough
CT: control target
= control target key end

     0   :  { %9 = vsyncpa [#allocation3], 0  ;;  %s489_s0 = inlined_call_operand.hbm [shape: f32[2,1024], index: 0, kind: input, shape index: {}]   ;;  %s490_s1 = inlined_call_operand.hbm [shape: f32[2,1024], index: 1, kind: input, shape index: {}]   ;;  %s491_s2 = inlined_call_operand.hbm [shape: f32[1,2,128], index: 2, kind: output, shape index: {0}]   ;;  %s492_s3 = inlined_call_operand.hbm [shape: f32[1,2,128], index: 3, kind: output, shape index: {1}]  }
   0x1   :  { %10 = vsyncpa [#allocation6], 0 }
   0x2   :  { %11 = vsyncpa [#allocation4], 0 }
   0x3   :  { %12 = vsyncpa [#allocation9], 0  ;;  %s416_s12 = smov [#allocation2]   ;;  %s417_s14 = smov [#allocation5]  }
   0x4   :  { %s25_s13 = sshll.u32 %s416_s12, 4  ;;  %s41_s15 = sshll.u32 %s417_s14, 4  ;;  %s26_s13 = int_to_ptr.vmem [resolvable:$true] %s25_s13  ;;  %s42_s15 = int_to_ptr.vmem [resolvable:$true] %s41_s15 }
   0x5   :  { %s320_s18 = scalar_lea.hbm %s489_s0, 256 }
   0x6   :  { %p321_p0 = scmp.ne.s32.totalorder %s489_s0, %s320_s18  ;;  %p324_p1 = scmp.lt.u32.totalorder %s320_s18, %s489_s0 }
   0x8   :  { %p326_p2 = pnand %p324_p1, %p321_p0 }
   0xa   :  { %329 = shalt.err (!%p326_p2)
}
   0xb   :  { %s330_s23 = scalar_lea.vmem %s26_s13, 256  ;;  %p335_p4 = scmp.lt.s32.totalorder %s26_s13, %s26_s13 }
   0xc   :  { %p331_p3 = scmp.ne.s32.totalorder %s26_s13, %s330_s23  ;;  %p336_p5 = scmp.lt.s32.totalorder %s330_s23, %s330_s23 }
   0xe   :  { %p337_p6 = por %p336_p5, %p335_p4 }
  0x10   :  { %p338_p7 = pnand %p337_p6, %p331_p3 }
  0x12   :  { %341 = shalt.err (!%p338_p7)
}
  0x13   :  { %28 = dma.hbm_to_vmem [thread:$0]  %s489_s0, 256, %s26_s13, [#allocation3]  }
  0x14   :  { %s342_s28 = scalar_lea.hbm %s490_s1, 256 }
  0x15   :  { %p343_p8 = scmp.ne.s32.totalorder %s490_s1, %s342_s28  ;;  %p346_p9 = scmp.lt.u32.totalorder %s342_s28, %s490_s1 }
  0x17   :  { %p348_p10 = pnand %p346_p9, %p343_p8 }
  0x19   :  { %351 = shalt.err (!%p348_p10)
}
  0x1a   :  { %s352_s6 = scalar_lea.vmem %s42_s15, 256  ;;  %p357_p12 = scmp.lt.s32.totalorder %s42_s15, %s42_s15 }
  0x1b   :  { %p353_p11 = scmp.ne.s32.totalorder %s42_s15, %s352_s6  ;;  %p358_p13 = scmp.lt.s32.totalorder %s352_s6, %s352_s6 }
  0x1d   :  { %p359_p0 = por %p358_p13, %p357_p12 }
  0x1f   :  { %p360_p1 = pnand %p359_p0, %p353_p11 }
  0x21   :  { %363 = shalt.err (!%p360_p1)
}
  0x22   :  { %44 = dma.hbm_to_vmem [thread:$0]  %s490_s1, 256, %s42_s15, [#allocation6]  }
  0x23   :  { %408 = dma.done.wait [#allocation3], 256  }
  0x24   :  { %409 = vsyncadd [#allocation3], 4294967040 }
  0x25   :  { %410 = dma.done.wait [#allocation6], 256  }
  0x26   :  { %411 = vsyncadd [#allocation6], 4294967040  ;;  %v418_v0 = vmov 0.0   ;;  %v70_v1 = vld [vmem:[#allocation2] sm:$0x3]  ;;  %s419_s1 = smov [#allocation7]  }
  0x27   :  { %63 = vst [vmem:[#allocation7] sm:$0x3] %v418_v0  ;;  %64 = vst [vmem:[#allocation8] sm:$0x3] %v418_v0  ;;  %v89_v2 = vld [vmem:[#allocation2 + $0x2] sm:$0x3] }
  0x28   :  { %v275_v3 = vmul.f32 -1.442695, %v70_v1  ;;  %v276_v4 = vmul.f32 -1.442695, %v89_v2  ;;  %v110_v5 = vld [vmem:[#allocation2 + $0x4] sm:$0x3] }
  0x29   :  { %v131_v6 = vld [vmem:[#allocation2 + $0x6] sm:$0x3]  ;;  %v277_v7 = vmul.f32 -1.442695, %v110_v5  ;;  %v152_v9 = vld [vmem:[#allocation2 + $0x8] sm:$0x3] }
  0x2a   :  { %288 = vpow2.f32 %v275_v3  ;;  %v278_v8 = vmul.f32 -1.442695, %v131_v6  ;;  %v173_v10 = vld [vmem:[#allocation2 + $0xa] sm:$0x3]  ;;  %v279_v11 = vmul.f32 -1.442695, %v152_v9 }
  0x2b   :  { %290 = vpow2.f32 %v276_v4  ;;  %v280_v12 = vmul.f32 -1.442695, %v173_v10  ;;  %v194_v13 = vld [vmem:[#allocation2 + $0xc] sm:$0x3]  ;;  %v215_v14 = vld [vmem:[#allocation2 + $0xe] sm:$0x3] }
  0x2c   :  { %292 = vpow2.f32 %v277_v7  ;;  %v281_v15 = vmul.f32 -1.442695, %v194_v13  ;;  %v282_v16 = vmul.f32 -1.442695, %v215_v14  ;;  %v77_v33 = vld [vmem:[#allocation5] sm:$0x3] }
  0x2d   :  { %294 = vpow2.f32 %v278_v8  ;;  %v97_v34 = vld [vmem:[#allocation5 + $0x2] sm:$0x3]  ;;  %v118_v36 = vld [vmem:[#allocation5 + $0x4] sm:$0x3]  ;;  %v139_v39 = vld [vmem:[#allocation5 + $0x6] sm:$0x3] }
  0x2e   :  { %296 = vpow2.f32 %v279_v11  ;;  %v160_v46 = vld [vmem:[#allocation5 + $0x8] sm:$0x3]  ;;  %v181_v54 = vld [vmem:[#allocation5 + $0xa] sm:$0x3]  ;;  %v202_v60 = vld [vmem:[#allocation5 + $0xc] sm:$0x3] }
  0x2f   :  { %298 = vpow2.f32 %v280_v12  ;;  %v223_v2 = vld [vmem:[#allocation5 + $0xe] sm:$0x3]  ;;  %v235_v13 = vld [vmem:[#allocation7] sm:$0x3]  ;;  %v238_v14 = vld [vmem:[#allocation8] sm:$0x3] }
  0x30   :  { %300 = vpow2.f32 %v281_v15  ;;  %s247_s8 = sshll.u32 %s419_s1, 4  ;;  %s420_s9 = smov [#allocation8]   ;;  %s248_s8 = int_to_ptr.vmem [resolvable:$true] %s247_s8 }
  0x31   :  { %302 = vpow2.f32 %v282_v16  ;;  %s257_s10 = sshll.u32 %s420_s9, 4  ;;  %s364_s11 = scalar_lea.vmem %s248_s8, 32  ;;  %s258_s10 = int_to_ptr.vmem [resolvable:$true] %s257_s10 }
  0x32   :  { %p365_p2 = scmp.ne.s32.totalorder %s248_s8, %s364_s11  ;;  %p369_p3 = scmp.lt.s32.totalorder %s248_s8, %s248_s8 }
  0x33   :  { %p370_p4 = scmp.lt.s32.totalorder %s364_s11, %s364_s11 }
  0x34   :  { %v289_v17 = vpop.eup %288 }
  0x35   :  { %v291_v18 = vpop.eup %290  ;;  %v74_v19 = vadd.f32 1.0, %v289_v17  ;;  %p371_p5 = por %p370_p4, %p369_p3 }
  0x36   :  { %v293_v20 = vpop.eup %292  ;;  %v93_v21 = vadd.f32 1.0, %v291_v18 }
  0x37   :  { %v295_v22 = vpop.eup %294  ;;  %304 = vrcp.f32 %v74_v19  ;;  %v114_v23 = vadd.f32 1.0, %v293_v20  ;;  %p372_p6 = pnand %p371_p5, %p365_p2 }
  0x38   :  { %v297_v24 = vpop.eup %296  ;;  %306 = vrcp.f32 %v93_v21  ;;  %v135_v25 = vadd.f32 1.0, %v295_v22 }
  0x39   :  { %v299_v26 = vpop.eup %298  ;;  %308 = vrcp.f32 %v114_v23  ;;  %v156_v27 = vadd.f32 1.0, %v297_v24 }
  0x3a   :  { %v301_v28 = vpop.eup %300  ;;  %310 = vrcp.f32 %v135_v25  ;;  %v177_v29 = vadd.f32 1.0, %v299_v26 }
  0x3b   :  { %v303_v30 = vpop.eup %302  ;;  %312 = vrcp.f32 %v156_v27  ;;  %v198_v31 = vadd.f32 1.0, %v301_v28 }
  0x3c   :  { %314 = vrcp.f32 %v177_v29  ;;  %v219_v32 = vadd.f32 1.0, %v303_v30 }
  0x3d   :  { %316 = vrcp.f32 %v198_v31 }
  0x3e   :  { %318 = vrcp.f32 %v219_v32 }
  0x41   :  { %v305_v35 = vpop.eup %304 }
  0x42   :  { %v307_v37 = vpop.eup %306  ;;  %v84_v38 = vmul.f32 %v305_v35, %v77_v33  ;;  %v86_v40 = vadd.f32 %v305_v35, %v77_v33 }
  0x43   :  { %v309_v41 = vpop.eup %308  ;;  %v105_v42 = vmul.f32 %v307_v37, %v97_v34  ;;  %v107_v43 = vadd.f32 %v307_v37, %v97_v34 }
  0x44   :  { %v311_v44 = vpop.eup %310  ;;  %v126_v45 = vmul.f32 %v309_v41, %v118_v36  ;;  %v128_v47 = vadd.f32 %v309_v41, %v118_v36 }
  0x45   :  { %v313_v48 = vpop.eup %312  ;;  %v106_v49 = vadd.f32 %v105_v42, %v84_v38  ;;  %v147_v50 = vmul.f32 %v311_v44, %v139_v39  ;;  %v108_v51 = vadd.f32 %v107_v43, %v86_v40  ;;  %v149_v52 = vadd.f32 %v311_v44, %v139_v39 }
  0x46   :  { %v315_v53 = vpop.eup %314  ;;  %v168_v56 = vmul.f32 %v313_v48, %v160_v46  ;;  %v170_v58 = vadd.f32 %v313_v48, %v160_v46 }
  0x47   :  { %v127_v55 = vadd.f32 %v126_v45, %v106_v49  ;;  %v129_v57 = vadd.f32 %v128_v47, %v108_v51  ;;  %v317_v59 = vpop.eup %316  ;;  %v189_v62 = vmul.f32 %v315_v53, %v181_v54  ;;  %v191_v0 = vadd.f32 %v315_v53, %v181_v54 }
  0x48   :  { %v319_v1 = vpop.eup %318  ;;  %v210_v4 = vmul.f32 %v317_v59, %v202_v60  ;;  %v212_v6 = vadd.f32 %v317_v59, %v202_v60 }
  0x49   :  { %v148_v61 = vadd.f32 %v147_v50, %v127_v55  ;;  %v150_v63 = vadd.f32 %v149_v52, %v129_v57  ;;  %v231_v8 = vmul.f32 %v319_v1, %v223_v2  ;;  %v233_v10 = vadd.f32 %v319_v1, %v223_v2 }
  0x4b   :  { %v169_v3 = vadd.f32 %v168_v56, %v148_v61  ;;  %v171_v5 = vadd.f32 %v170_v58, %v150_v63 }
  0x4d   :  { %v190_v7 = vadd.f32 %v189_v62, %v169_v3  ;;  %v192_v9 = vadd.f32 %v191_v0, %v171_v5 }
  0x4f   :  { %v211_v11 = vadd.f32 %v210_v4, %v190_v7  ;;  %v213_v12 = vadd.f32 %v212_v6, %v192_v9 }
  0x51   :  { %v232_v15 = vadd.f32 %v231_v8, %v211_v11  ;;  %v234_v16 = vadd.f32 %v233_v10, %v213_v12 }
  0x53   :  { %v236_v17 = vadd.f32 %v235_v13, %v232_v15  ;;  %v239_v18 = vadd.f32 %v238_v14, %v234_v16 }
  0x55   :  { %237 = vst [vmem:[#allocation7] sm:$0x3] %v236_v17  ;;  %240 = vst [vmem:[#allocation8] sm:$0x3] %v239_v18 }
  0x56   :  { %375 = shalt.err (!%p372_p6)
}
  0x57   :  { %s376_s14 = scalar_lea.hbm %s491_s2, 32 }
  0x58   :  { %p377_p7 = scmp.ne.s32.totalorder %s491_s2, %s376_s14  ;;  %p380_p8 = scmp.lt.u32.totalorder %s376_s14, %s491_s2 }
  0x5a   :  { %p382_p9 = pnand %p380_p8, %p377_p7 }
  0x5c   :  { %385 = shalt.err (!%p382_p9)
}
  0x5d   :  { %250 = dma.vmem_to_hbm [thread:$0]  %s248_s8, 32, %s491_s2, [#allocation4]  }
  0x5e   :  { %s386_s21 = scalar_lea.vmem %s258_s10, 32  ;;  %p391_p11 = scmp.lt.s32.totalorder %s258_s10, %s258_s10 }
  0x5f   :  { %p387_p10 = scmp.ne.s32.totalorder %s258_s10, %s386_s21  ;;  %p392_p12 = scmp.lt.s32.totalorder %s386_s21, %s386_s21 }
  0x61   :  { %p393_p13 = por %p392_p12, %p391_p11 }
  0x63   :  { %p394_p0 = pnand %p393_p13, %p387_p10 }
  0x65   :  { %397 = shalt.err (!%p394_p0)
}
  0x66   :  { %s398_s24 = scalar_lea.hbm %s492_s3, 32 }
  0x67   :  { %p399_p1 = scmp.ne.s32.totalorder %s492_s3, %s398_s24  ;;  %p402_p2 = scmp.lt.u32.totalorder %s398_s24, %s492_s3 }
  0x69   :  { %p404_p3 = pnand %p402_p2, %p399_p1 }
  0x6b   :  { %407 = shalt.err (!%p404_p3)
}
  0x6c   :  { %260 = dma.vmem_to_hbm [thread:$0]  %s258_s10, 32, %s492_s3, [#allocation9]  }
  0x6d   :  { %412 = dma.done.wait [#allocation4], 32  }
  0x6e   :  { %413 = vsyncadd [#allocation4], 4294967264 }
  0x6f   :  { %414 = dma.done.wait [#allocation9], 32  }
  0x70   :  { %415 = vsyncadd [#allocation9], 4294967264 }
  0x71   :  { %267 = vsyncpa [#allocation3], 1 }
  0x72   :  { %268 = vsyncpa [#allocation6], 1 }
  0x73   :  { %269 = vsyncpa [#allocation4], 1 }
  0x74   :  { %270 = vsyncpa [#allocation9], 1 }

</bundles_post_ra>
